<compile_context>
chip_gen: v6e
topology: v6e:2x2x1
jax: 0.10.0
libtpu: 0.0.40
codegen_flags: <defaults>
</compile_context>

<pallas_src>
import functools

import jax
import jax.numpy as jnp
from jax.experimental import pallas as pl
from jax.experimental.pallas import tpu as pltpu


def _round_up(x: int, m: int) -> int:
    return (x + m - 1) // m * m


def _cdiv(a: int, b: int) -> int:
    return -(-a // b)


def _tpu_vmem_bytes() -> int:
    """Best-effort VMEM capacity query; conservative (v7x-like) fallback."""
    try:
        info = pltpu.get_tpu_info()
        vmem = int(getattr(info, "vmem_capacity_bytes", 0))
        if vmem > 0:
            return vmem
    except Exception:
        pass
    return 64 << 20  # assume the smallest (v7x per-TensorCore) VMEM


def _vmem_block_bytes(shape, itemsize=4) -> int:
    """Padded VMEM footprint of a block: last dim ->128 lanes, 2nd-last ->8 sublanes."""
    if len(shape) == 1:
        return 8 * _round_up(shape[0], 128) * itemsize
    rows = _round_up(shape[-2], 8)
    cols = _round_up(shape[-1], 128)
    lead = 1
    for d in shape[:-2]:
        lead *= int(d)
    return lead * rows * cols * itemsize


def _make_mlp_kernel(num_linear: int, last_sigmoid: bool):
    """Kernel computing the full MLP chain on one batch tile, all in VMEM."""

    def kernel(y_hat_ref, y_star_ref, *refs):
        o_ref = refs[-1]
        p = refs[:-1]  # (w1_top, w1_bot, b1, w2, b2, ..., wL, bL)

        tb, n_class = y_hat_ref.shape

        # ---- in-kernel casts (no wrapper-side HBM cast passes) ----
        yh = y_hat_ref[...].astype(jnp.float32)                   # (TB, C)
        ys = y_star_ref[...].astype(jnp.int32)                    # (TB, 1)

        # ---- fused one-hot + first linear layer + ReLU ----
        # NOTE: out-of-range labels yield an all-zero one-hot (jax.nn.one_hot
        # semantics), whereas torch.F.one_hot would raise.
        cls = jax.lax.broadcasted_iota(jnp.int32, (tb, n_class), 1)
        one_hot = (cls == ys).astype(jnp.float32)                 # (TB, C)

        h = jnp.dot(yh, p[0][...], preferred_element_type=jnp.float32)
        h = h + jnp.dot(one_hot, p[1][...], preferred_element_type=jnp.float32)
        h = h + p[2][...]
        h = jnp.maximum(h, 0.0)

        # ---- remaining linear layers (ReLU on all but the last) ----
        n_rest = num_linear - 1
        for j in range(n_rest):
            w = p[3 + 2 * j][...]
            b = p[4 + 2 * j][...]
            h = jnp.dot(h, w, preferred_element_type=jnp.float32) + b
            if j < n_rest - 1:
                h = jnp.maximum(h, 0.0)

        if last_sigmoid:
            h = jax.nn.sigmoid(h)

        # lane-dense store: (TB, 1) -> (1, TB)
        o_ref[...] = h.reshape(1, tb).astype(o_ref.dtype)

    return kernel


def init_mlp_params(key, n_class: int, n_layers: int, hidden_size: int):
    """PyTorch-style uniform(+-1/sqrt(fan_in)) init.

    Weights stored transposed vs nn.Linear: (in_features, out_features).
    Biases stored as (1, out_features).
    """
    dims = [2 * n_class] + [hidden_size] * (n_layers - 1) + [1]
    params = []
    for i in range(len(dims) - 1):
        fan_in, fan_out = dims[i], dims[i + 1]
        key, kw, kb = jax.random.split(key, 3)
        bound = 1.0 / jnp.sqrt(jnp.float32(fan_in))
        w = jax.random.uniform(kw, (fan_in, fan_out), jnp.float32, -bound, bound)
        b = jax.random.uniform(kb, (1, fan_out), jnp.float32, -bound, bound)
        params.append((w, b))
    return params


@functools.partial(jax.jit,
                   static_argnames=("n_class", "last_sigmoid", "max_tile"))
def mlp_loss_trainer_forward(y_hat, y_star, params, *, n_class: int,
                             last_sigmoid: bool = False, max_tile=None):
    batch = y_hat.shape[0]
    num_linear = len(params)
    hidden = params[0][0].shape[1]

    # --- batch tile size: big tiles amortize per-grid-step overhead ---------
    vmem_cap = _tpu_vmem_bytes()
    cap = 4096 if vmem_cap <= (64 << 20) else 8192   # v7x vs v5e/v6e
    if max_tile is not None:
        cap = min(cap, int(max_tile))
    cap = max(_round_up(cap, 128), 128)

    if batch <= cap:
        tb = batch                      # single full-array tile; no padding at all
    else:
        ntiles = _cdiv(batch, cap)      # balanced split; last tile is masked
        tb = _round_up(_cdiv(batch, ntiles), 128)
    grid = (_cdiv(batch, tb),)

    # --- inputs: native dtypes straight into the kernel (no HBM cast pass) --
    y_star_col = y_star.reshape(batch, 1)

    # --- flatten params; split W1 so the one-hot half never hits HBM --------
    w1, b1 = params[0]
    flat = [w1[:n_class, :], w1[n_class:, :], b1]
    for w, b in params[1:]:
        flat.extend([w, b])

    def resident(arr):
        # Full-array block, constant index_map -> fetched once, VMEM-resident.
        return pl.BlockSpec(arr.shape, lambda i: (0,) * arr.ndim)

    in_specs = [
        pl.BlockSpec((tb, n_class), lambda i: (i, 0)),   # y_hat tile
        pl.BlockSpec((tb, 1), lambda i: (i, 0)),         # y_star tile
    ] + [resident(a) for a in flat]

    out_specs = pl.BlockSpec((1, tb), lambda i: (0, i))  # lane-dense slab

    # --- cost estimate -------------------------------------------------------
    param_bytes = sum(int(a.size) * 4 for a in flat)
    flops = 2 * batch * (2 * n_class * hidden
                         + max(num_linear - 2, 0) * hidden * hidden + hidden)
    bytes_accessed = (batch * (n_class * y_hat.dtype.itemsize
                               + y_star.dtype.itemsize + 4) + param_bytes)
    cost = pl.CostEstimate(flops=flops,
                           transcendentals=batch if last_sigmoid else 0,
                           bytes_accessed=bytes_accessed)

    # --- VMEM budget from PADDED block sizes (lane->128, sublane->8) --------
    blk_in = (_vmem_block_bytes((tb, n_class)) + _vmem_block_bytes((tb, 1)))
    blk_out = _vmem_block_bytes((1, tb))
    param_pad = sum(_vmem_block_bytes(a.shape) for a in flat)
    interm = 6 * _vmem_block_bytes((tb, max(hidden, n_class)))
    needed = 2 * (blk_in + blk_out) + 2 * param_pad + interm + (2 << 20)
    hard_cap = max(int(0.75 * vmem_cap), 32 << 20)
    vmem_limit = int(min(max(needed, 8 << 20), hard_cap))

    out = pl.pallas_call(
        _make_mlp_kernel(num_linear, last_sigmoid),
        grid=grid,
        in_specs=in_specs,
        out_specs=out_specs,
        out_shape=jax.ShapeDtypeStruct((1, batch), jnp.float32),
        compiler_params=pltpu.CompilerParams(
            dimension_semantics=("parallel",),
            vmem_limit_bytes=vmem_limit),
        cost_estimate=cost,
    )(y_hat, y_star_col, *flat)

    return out.reshape(batch, 1)


def _reference_forward(y_hat, y_star, params, n_class, last_sigmoid):
    one_hot = jax.nn.one_hot(y_star, n_class, dtype=jnp.float32)
    h = jnp.concatenate([y_hat.astype(jnp.float32), one_hot], axis=-1)
    for i, (w, b) in enumerate(params):
        h = h @ w + b
        if i < len(params) - 1:
            h = jnp.maximum(h, 0.0)
    return jax.nn.sigmoid(h) if last_sigmoid else h


if __name__ == "__main__":
    n_class = 4
    n_layers = 3
    hidden_size = 32

    key = jax.random.PRNGKey(0)
    k_params, k_yhat, k_ystar = jax.random.split(key, 3)
    params = init_mlp_params(k_params, n_class, n_layers, hidden_size)

    # --- small demo, single tile (no sigmoid) ---
    batch = 8
    y_hat = jax.random.normal(k_yhat, (batch, n_class), jnp.float32)
    y_star = jax.random.randint(k_ystar, (batch,), 0, n_class, jnp.int32)

    out = mlp_loss_trainer_forward(y_hat, y_star, params,
                                   n_class=n_class, last_sigmoid=False)
    out = jax.block_until_ready(out)
    ref = _reference_forward(y_hat, y_star, params, n_class, False)
    assert out.shape == (batch, 1), out.shape
    assert jnp.allclose(out, ref, atol=1e-4, rtol=1e-4), (out, ref)

    # --- sigmoid head variant ---
    out_s = mlp_loss_trainer_forward(y_hat, y_star, params,
                                     n_class=n_class, last_sigmoid=True)
    out_s = jax.block_until_ready(out_s)
    ref_s = _reference_forward(y_hat, y_star, params, n_class, True)
    assert jnp.allclose(out_s, ref_s, atol=1e-4, rtol=1e-4), (out_s, ref_s)

    # --- multi-tile path with a partial (masked) last tile ---
    batch2 = 1000
    k2a, k2b = jax.random.split(jax.random.PRNGKey(1))
    y_hat2 = jax.random.normal(k2a, (batch2, n_class), jnp.float32)
    y_star2 = jax.random.randint(k2b, (batch2,), 0, n_class, jnp.int32)
    out2 = mlp_loss_trainer_forward(y_hat2, y_star2, params, n_class=n_class,
                                    last_sigmoid=False, max_tile=256)
    out2 = jax.block_until_ready(out2)
    ref2 = _reference_forward(y_hat2, y_star2, params, n_class, False)
    assert out2.shape == (batch2, 1), out2.shape
    assert jnp.allclose(out2, ref2, atol=1e-4, rtol=1e-4)

    print("KERNEL_OK")
</pallas_src>

<mosaic_0001>
module attributes {stable_mosaic.version = 11 : i64} {
  func.func @kernel(%arg0: i32, %arg1: memref<8x4xf32, #tpu.memory_space<vmem>>, %arg2: memref<8x1xi32, #tpu.memory_space<vmem>>, %arg3: memref<4x32xf32, #tpu.memory_space<vmem>>, %arg4: memref<4x32xf32, #tpu.memory_space<vmem>>, %arg5: memref<1x32xf32, #tpu.memory_space<vmem>>, %arg6: memref<32x32xf32, #tpu.memory_space<vmem>>, %arg7: memref<1x32xf32, #tpu.memory_space<vmem>>, %arg8: memref<32x1xf32, #tpu.memory_space<vmem>>, %arg9: memref<1x1xf32, #tpu.memory_space<vmem>>, %arg10: memref<1x8xf32, #tpu.memory_space<vmem>>) attributes {dimension_semantics = [#tpu.dimension_semantics<parallel>], iteration_bounds = array<i64: 1>, scalar_prefetch = 0 : i64, scratch_operands = 0 : i64, tpu.core_type = #tpu.core_type<tc>, window_params = [{transform_indices = @transform_0, window_bounds = array<i64: 8, 4>}, {transform_indices = @transform_1, window_bounds = array<i64: 8, 1>}, {pipeline_mode = #tpu.pipeline_mode<synchronous>, transform_indices = @transform_2, window_bounds = array<i64: 4, 32>}, {pipeline_mode = #tpu.pipeline_mode<synchronous>, transform_indices = @transform_3, window_bounds = array<i64: 4, 32>}, {pipeline_mode = #tpu.pipeline_mode<synchronous>, transform_indices = @transform_4, window_bounds = array<i64: 1, 32>}, {pipeline_mode = #tpu.pipeline_mode<synchronous>, transform_indices = @transform_5, window_bounds = array<i64: 32, 32>}, {pipeline_mode = #tpu.pipeline_mode<synchronous>, transform_indices = @transform_6, window_bounds = array<i64: 1, 32>}, {pipeline_mode = #tpu.pipeline_mode<synchronous>, transform_indices = @transform_7, window_bounds = array<i64: 32, 1>}, {pipeline_mode = #tpu.pipeline_mode<synchronous>, transform_indices = @transform_8, window_bounds = array<i64: 1, 1>}, {transform_indices = @transform_9, window_bounds = array<i64: 1, 8>}]} {
    %c0 = arith.constant 0 : index
    %c0_0 = arith.constant 0 : index
    %0 = vector.load %arg1[%c0, %c0_0] : memref<8x4xf32, #tpu.memory_space<vmem>>, vector<8x4xf32>
    %c0_1 = arith.constant 0 : index
    %c0_2 = arith.constant 0 : index
    %1 = vector.load %arg2[%c0_1, %c0_2] : memref<8x1xi32, #tpu.memory_space<vmem>>, vector<8x1xi32>
    %2 = tpu.iota {dimensions = array<i32: 1>} : vector<8x4xi32>
    %3 = vector.broadcast %1 : vector<8x1xi32> to vector<8x4xi32>
    %4 = arith.cmpi eq, %2, %3 : vector<8x4xi32>
    %5 = arith.extui %4 : vector<8x4xi1> to vector<8x4xi32>
    %6 = arith.sitofp %5 : vector<8x4xi32> to vector<8x4xf32>
    %c0_3 = arith.constant 0 : index
    %c0_4 = arith.constant 0 : index
    %7 = vector.load %arg3[%c0_3, %c0_4] : memref<4x32xf32, #tpu.memory_space<vmem>>, vector<4x32xf32>
    %cst = arith.constant dense<0.000000e+00> : vector<8x32xf32>
    %8 = tpu.matmul %0, %7, %cst {dimension_numbers = #tpu.dot_dimension_numbers<[1], [0], [0], [1], [0, 0, 1, 1], [], []>} : vector<8x4xf32>, vector<4x32xf32>, vector<8x32xf32> -> vector<8x32xf32>
    %c0_5 = arith.constant 0 : index
    %c0_6 = arith.constant 0 : index
    %9 = vector.load %arg4[%c0_5, %c0_6] : memref<4x32xf32, #tpu.memory_space<vmem>>, vector<4x32xf32>
    %cst_7 = arith.constant dense<0.000000e+00> : vector<8x32xf32>
    %10 = tpu.matmul %6, %9, %cst_7 {dimension_numbers = #tpu.dot_dimension_numbers<[1], [0], [0], [1], [0, 0, 1, 1], [], []>} : vector<8x4xf32>, vector<4x32xf32>, vector<8x32xf32> -> vector<8x32xf32>
    %11 = arith.addf %8, %10 : vector<8x32xf32>
    %c0_8 = arith.constant 0 : index
    %c0_9 = arith.constant 0 : index
    %12 = vector.load %arg5[%c0_8, %c0_9] : memref<1x32xf32, #tpu.memory_space<vmem>>, vector<1x32xf32>
    %13 = vector.broadcast %12 : vector<1x32xf32> to vector<8x32xf32>
    %14 = arith.addf %11, %13 : vector<8x32xf32>
    %cst_10 = arith.constant 0.000000e+00 : f32
    %15 = vector.broadcast %cst_10 : f32 to vector<8x32xf32>
    %16 = arith.maximumf %14, %15 : vector<8x32xf32>
    %c0_11 = arith.constant 0 : index
    %c0_12 = arith.constant 0 : index
    %17 = vector.load %arg6[%c0_11, %c0_12] : memref<32x32xf32, #tpu.memory_space<vmem>>, vector<32x32xf32>
    %c0_13 = arith.constant 0 : index
    %c0_14 = arith.constant 0 : index
    %18 = vector.load %arg7[%c0_13, %c0_14] : memref<1x32xf32, #tpu.memory_space<vmem>>, vector<1x32xf32>
    %cst_15 = arith.constant dense<0.000000e+00> : vector<8x32xf32>
    %19 = tpu.matmul %16, %17, %cst_15 {dimension_numbers = #tpu.dot_dimension_numbers<[1], [0], [0], [1], [0, 0, 1, 1], [], []>} : vector<8x32xf32>, vector<32x32xf32>, vector<8x32xf32> -> vector<8x32xf32>
    %20 = vector.broadcast %18 : vector<1x32xf32> to vector<8x32xf32>
    %21 = arith.addf %19, %20 : vector<8x32xf32>
    %cst_16 = arith.constant 0.000000e+00 : f32
    %22 = vector.broadcast %cst_16 : f32 to vector<8x32xf32>
    %23 = arith.maximumf %21, %22 : vector<8x32xf32>
    %c0_17 = arith.constant 0 : index
    %c0_18 = arith.constant 0 : index
    %24 = vector.load %arg8[%c0_17, %c0_18] : memref<32x1xf32, #tpu.memory_space<vmem>>, vector<32x1xf32>
    %c0_19 = arith.constant 0 : index
    %c0_20 = arith.constant 0 : index
    %25 = vector.load %arg9[%c0_19, %c0_20] : memref<1x1xf32, #tpu.memory_space<vmem>>, vector<1x1xf32>
    %cst_21 = arith.constant dense<0.000000e+00> : vector<8x1xf32>
    %26 = tpu.matmul %23, %24, %cst_21 {dimension_numbers = #tpu.dot_dimension_numbers<[1], [0], [0], [1], [0, 0, 1, 1], [], []>} : vector<8x32xf32>, vector<32x1xf32>, vector<8x1xf32> -> vector<8x1xf32>
    %27 = vector.broadcast %25 : vector<1x1xf32> to vector<8x1xf32>
    %28 = arith.addf %26, %27 : vector<8x1xf32>
    %29 = vector.shape_cast %28 : vector<8x1xf32> to vector<1x8xf32>
    %c0_22 = arith.constant 0 : index
    %c0_23 = arith.constant 0 : index
    %30 = vector.load %arg10[%c0_22, %c0_23] : memref<1x8xf32, #tpu.memory_space<vmem>>, vector<1x8xf32>
    tpu.vector_store %arg10[%c0_22, %c0_23], %29 {strides = array<i32>} : memref<1x8xf32, #tpu.memory_space<vmem>>, vector<1x8xf32>,
    return
  }
  func.func @transform_0(%arg0: i32) -> (i32, i32) {
    %c0_i32 = arith.constant 0 : i32
    %c0_i32_0 = arith.constant 0 : i32
    return %arg0, %c0_i32 : i32, i32
  }
  func.func @transform_1(%arg0: i32) -> (i32, i32) {
    %c0_i32 = arith.constant 0 : i32
    %c0_i32_0 = arith.constant 0 : i32
    return %arg0, %c0_i32 : i32, i32
  }
  func.func @transform_2(%arg0: i32) -> (i32, i32) {
    %c0_i32 = arith.constant 0 : i32
    %c0_i32_0 = arith.constant 0 : i32
    %c0_i32_1 = arith.constant 0 : i32
    return %c0_i32, %c0_i32_0 : i32, i32
  }
  func.func @transform_3(%arg0: i32) -> (i32, i32) {
    %c0_i32 = arith.constant 0 : i32
    %c0_i32_0 = arith.constant 0 : i32
    %c0_i32_1 = arith.constant 0 : i32
    return %c0_i32, %c0_i32_0 : i32, i32
  }
  func.func @transform_4(%arg0: i32) -> (i32, i32) {
    %c0_i32 = arith.constant 0 : i32
    %c0_i32_0 = arith.constant 0 : i32
    %c0_i32_1 = arith.constant 0 : i32
    return %c0_i32, %c0_i32_0 : i32, i32
  }
  func.func @transform_5(%arg0: i32) -> (i32, i32) {
    %c0_i32 = arith.constant 0 : i32
    %c0_i32_0 = arith.constant 0 : i32
    %c0_i32_1 = arith.constant 0 : i32
    return %c0_i32, %c0_i32_0 : i32, i32
  }
  func.func @transform_6(%arg0: i32) -> (i32, i32) {
    %c0_i32 = arith.constant 0 : i32
    %c0_i32_0 = arith.constant 0 : i32
    %c0_i32_1 = arith.constant 0 : i32
    return %c0_i32, %c0_i32_0 : i32, i32
  }
  func.func @transform_7(%arg0: i32) -> (i32, i32) {
    %c0_i32 = arith.constant 0 : i32
    %c0_i32_0 = arith.constant 0 : i32
    %c0_i32_1 = arith.constant 0 : i32
    return %c0_i32, %c0_i32_0 : i32, i32
  }
  func.func @transform_8(%arg0: i32) -> (i32, i32) {
    %c0_i32 = arith.constant 0 : i32
    %c0_i32_0 = arith.constant 0 : i32
    %c0_i32_1 = arith.constant 0 : i32
    return %c0_i32, %c0_i32_0 : i32, i32
  }
  func.func @transform_9(%arg0: i32) -> (i32, i32) {
    %c0_i32 = arith.constant 0 : i32
    %c0_i32_0 = arith.constant 0 : i32
    return %c0_i32, %arg0 : i32, i32
  }
}

</mosaic_0001>

<bundles_post_ra>
// kernel: mlp_loss_trainer_forward.1
= control target key start
LH: loop header
LB: loop body
LE: loop exit
PB: predicated region body
PF: predicated region fallthrough
CT: control target
= control target key end

     0   :  { %s594_s0 = inlined_call_operand.vmem [shape: f32[8,4], index: 0, kind: input, shape index: {}]   ;;  %s595_s1 = inlined_call_operand.vmem [shape: s32[8,1], index: 1, kind: input, shape index: {}]   ;;  %s596_s2 = inlined_call_operand.vmem [shape: f32[4,32], index: 2, kind: input, shape index: {}]   ;;  %s597_s3 = inlined_call_operand.vmem [shape: f32[4,32], index: 3, kind: input, shape index: {}]   ;;  %s598_s4 = inlined_call_operand.vmem [shape: f32[1,32], index: 4, kind: input, shape index: {}]   ;;  %s599_s5 = inlined_call_operand.vmem [shape: f32[32,32], index: 5, kind: input, shape index: {}]   ;;  %s600_s6 = inlined_call_operand.vmem [shape: f32[1,32], index: 6, kind: input, shape index: {}]   ;;  %s601_s7 = inlined_call_operand.vmem [shape: f32[32,1], index: 7, kind: input, shape index: {}]   ;;  %s602_s8 = inlined_call_operand.<no memory space> [shape: f32[1,1], index: 8, kind: input, shape index: {}]   ;;  %s603_s9 = inlined_call_operand.hbm [shape: f32[1,8], index: 9, kind: output, shape index: {}]  }
   0x1   :  { %v14_v0 = vstv %s602_s8 }
   0x2   :  { %15 = vst [vmem:[#allocation2] sm:$0x1] %v14_v0 }
   0x3   :  { %v36_v1 = vld [vmem:[%s595_s1] sm:$0xff]  ;;  %vm51_vm0 = vcmask 1043456   ;;  %v488_v3 = vmov 0   ;;  %v489_v4 = vmov 0.0   ;;  %vm47_vm1 = vcmask 31744  }
   0x4   :  { %v45_v2 = vld [vmem:[%s596_s2] sm:$0xf]  ;;  %465 = vset.pattern.permute.xlu0 %v488_v3  ;;  %434 = vmatprep.subr.mxu1 %v489_v4 }
   0x5   :  { %v35_v5 = vld [vmem:[%s594_s0] sm:$0xff]  ;;  %40 = vperm.xlu0 %465, %v36_v1   ;;  %435 = vmatpush3.msk.msra.mxu1 %vm51_vm0, %v45_v2 }
   0x6   :  { %v46_v6 = vld [vmem:[%s597_s3] sm:$0xf] }
   0x7   :  { %16 = vsyncpa [#allocation4], 0  ;;  %vm490_vm2 = vmmov 0   ;;  %429 = vmatprep.subr.mxu0 %v489_v4  ;;  %450 = vmatprep.subr.mxu1 %v489_v4  ;;  %v37_v7 = vlaneseq  ;;  %v213_v11 = vld [vmem:[%s599_s5 + $0x18] sm:$0xff]  ;;  %v212_v12 = vld [vmem:[%s599_s5 + $0x10] sm:$0xff]  ;;  %vm221_vm4 = vcmask 261120  }
   0x8   :  { %436 = vmatprep.mubr.msk.f32.mxu1 %vm490_vm2, %v489_v4  ;;  %430 = vmatpush3.msk.msra.mxu0 %vm51_vm0, %v46_v6  ;;  %v211_v13 = vld [vmem:[%s599_s5 + $0x8] sm:$0xff]  ;;  %v210_v15 = vld [vmem:[%s599_s5] sm:$0xff]  ;;  %v299_v17 = vld [vmem:[%s601_s7 + $0x18] sm:$0xff]  ;;  %s491_s11 = smov [#allocation3]   ;;  %vm389_vm5 = vcmask 57344  }
   0x9   :  { %437 = vmatmul.mubr.msk.f32.vlgmr.msra.gmra.mxu1 %vm47_vm1, %v35_v5  ;;  %431 = vmatprep.mubr.msk.f32.mxu0 %vm490_vm2, %v489_v4  ;;  %v38_v8 = vand.u32 127, %v37_v7  ;;  %v410_v19 = vld [vmem:[%s598_s4] ss:$0 sm:$0xff]  ;;  %v298_v24 = vld [vmem:[%s601_s7 + $0x10] sm:$0xff]  ;;  %v297_v25 = vld [vmem:[%s601_s7 + $0x8] sm:$0xff]  ;;  %v385_v36 = vshrl.u32 %v37_v7, 7 }
   0xa   :  { %439 = vmatprep.subr.mxu0 %v489_v4  ;;  %458 = vmatprep.mubr.msk.f32.mxu1 %vm490_vm2, %v489_v4  ;;  %v296_v26 = vld [vmem:[%s601_s7] sm:$0xff]  ;;  %s397_s7 = sshll.u32 %s491_s11, 4  ;;  %s398_s7 = int_to_ptr.vmem [resolvable:$true] %s397_s7 }
   0xb   :  { %451 = vmatpush3.msra.mxu1 %v299_v17  ;;  %v411_v27 = vld [vmem:[%s600_s6] ss:$0 sm:$0xff]  ;;  %v386_v37 = vsub.s32 %v38_v8, %v385_v36  ;;  %s466_s6 = scalar_lea.vmem %s398_s7, 16  ;;  %s470_s12 = scalar_lea.vmem %s398_s7, 32 }
   0xc   :  { %452 = vmatprep.subr.mxu1 %v489_v4  ;;  %v413_v32 = vld [vmem:[#allocation2] ss:$0 sm:$0xff]  ;;  %p467_p0 = scmp.ne.s32.totalorder %s398_s7, %s466_s6  ;;  %p471_p1 = scmp.lt.s32.totalorder %s398_s7, %s398_s7 }
   0xd   :  { %453 = vmatpush3.msra.mxu1 %v298_v24  ;;  %p472_p2 = scmp.lt.s32.totalorder %s470_s12, %s466_s6 }
   0xe   :  { %454 = vmatprep.subr.mxu1 %v489_v4 }
   0xf   :  { %455 = vmatpush3.msra.mxu1 %v297_v25  ;;  %p473_p3 = por %p472_p2, %p471_p1 }
  0x10   :  { %456 = vmatprep.subr.mxu1 %v489_v4 }
  0x11   :  { %457 = vmatpush3.msra.mxu1 %v296_v26  ;;  %p474_p4 = pnand %p473_p3, %p467_p0 }
  0x80   :  { %v41_v9 = vpop.permute.xlu0 %40 }
  0x81   :  { %vm42_vm3 = vcmp.eq.s32.totalorder %v38_v8, %v41_v9 }
  0x82   :  { %v405_v10 = vsel %vm42_vm3, 1.0, %v489_v4 }
  0x83   :  { %432 = vmatmul.mubr.msk.f32.vlgmr.msra.gmra.mxu0 %vm47_vm1, %v405_v10 }
  0x84   :  { %447 = vmatprep.mubr.msk.f32.mxu0 %vm490_vm2, %v489_v4  ;;  %440 = vmatpush3.msra.mxu0 %v213_v11 }
  0x85   :  { %441 = vmatprep.subr.mxu0 %v489_v4 }
  0x86   :  { %442 = vmatpush3.msra.mxu0 %v212_v12 }
  0x87   :  { %443 = vmatprep.subr.mxu0 %v489_v4 }
  0x88   :  { %444 = vmatpush3.msra.mxu0 %v211_v13 }
  0x89   :  { %445 = vmatprep.subr.mxu0 %v489_v4 }
  0x8a   :  { %446 = vmatpush3.msra.mxu0 %v210_v15 }
  0xc9   :  { %v197_v14 = vpop.f32.mrf.mxu1 }
  0xcb   :  { %v438_v16 = vpop.f32.mrf.mxu1 }
 0x143   :  { %v121_v18 = vpop.f32.mrf.mxu0 }
 0x144   :  { %v198_v20 = vadd.f32 %v197_v14, %v121_v18 }
 0x145   :  { %v433_v21 = vpop.f32.mrf.mxu0 }
 0x146   :  { %v208_v22 = vadd.f32 %v410_v19, %v198_v20 }
 0x148   :  { %v209_v23 = vmax.f32 %v208_v22, 0.0 }
 0x14a   :  { %448 = vmatmul.mubr.msk.f32.vlgmr.msra.gmra.mxu0 %vm221_vm4, %v209_v23 }
 0x20a   :  { %v291_v28 = vpop.f32.mrf.mxu0 }
 0x20b   :  { %v292_v29 = vadd.f32 %v411_v27, %v291_v28 }
 0x20c   :  { %v449_v30 = vpop.f32.mrf.mxu0 }
 0x20d   :  { %v295_v31 = vmax.f32 %v292_v29, 0.0 }
 0x20f   :  { %459 = vmatmul.mubr.msk.f32.vlgmr.msra.gmra.mxu1 %vm221_vm4, %v295_v31 }
 0x2cf   :  { %v376_v33 = vpop.f32.mrf.mxu1 }
 0x2d0   :  { %v377_v34 = vadd.f32 %v413_v32, %v376_v33 }
 0x2d1   :  { %v460_v35 = vpop.f32.mrf.mxu1 }
 0x2d2   :  { %382 = vperm.xlu0 %465, %v377_v34  }
 0x34d   :  { %v383_v38 = vpop.permute.xlu0 %382 }
 0x34e   :  { %v387_v39 = vrot.slane %v383_v38, %v386_v37 }
 0x350   :  { %390 = vst.msk [vmem:[#allocation3] sm:$0x1] %vm389_vm5, %v387_v39 }
 0x351   :  { %477 = shalt.err (!%p474_p4)
}
 0x352   :  { %400 = dma.vmem_to_hbm [thread:$0]  %s398_s7, 16, %s603_s9, [#allocation4]  }
 0x353   :  { %486 = dma.done.wait [#allocation4], 16  }
 0x354   :  { %487 = vsyncadd [#allocation4], 4294967280 }
 0x355   :  { %404 = vsyncpa [#allocation4], 1 }

</bundles_post_ra>
